<compile_context>
chip_gen: v6e
topology: v6e:2x2x1
jax: 0.10.0
libtpu: 0.0.40
codegen_flags: <defaults>
</compile_context>

<pallas_src>
import functools
import math

import numpy as np

import jax
import jax.numpy as jnp
from jax import lax
from jax.experimental import pallas as pl
from jax.experimental.pallas import tpu as pltpu


_CUBIC_A = -0.5  # PIL BICUBIC cubic-convolution coefficient
_TARGET_BLOCK_BYTES = 2 * 1024 * 1024  # ~2 MiB blocks: amortize ~0.35us/step,
                                       # fit v7x 32 MiB scoped VMEM when x2-buffered


def _cubic_weight(d: float, a: float = _CUBIC_A) -> float:
    d = abs(d)
    if d < 1.0:
        return (a + 2.0) * d ** 3 - (a + 3.0) * d ** 2 + 1.0
    if d < 2.0:
        return a * d ** 3 - 5.0 * a * d ** 2 + 8.0 * a * d - 4.0 * a
    return 0.0


def _bicubic_weights(t: float):
    # taps at offsets (s0-1, s0, s0+1, s0+2); distances (1+t, t, 1-t, 2-t)
    return [_cubic_weight(1.0 + t), _cubic_weight(t),
            _cubic_weight(1.0 - t), _cubic_weight(2.0 - t)]


def _bicubic_translate_matrix(width: int, tx: float) -> np.ndarray:
    """M with out[:, x] = (in @ M)[:, x] ~= bicubic sample of in at x + tx.

    Columns whose source center x + tx is outside [0, width-1] are all zero
    (PIL fills the image with black when no fillcolor is given); taps are
    clamped at the borders.
    """
    s0 = math.floor(tx)
    w = _bicubic_weights(tx - s0)
    m = np.zeros((width, width), np.float32)
    for x in range(width):
        src = x + tx
        if src < 0.0 or src > width - 1:
            continue  # fill with 0
        for k in range(4):
            j = min(max(x + s0 - 1 + k, 0), width - 1)
            m[j, x] += w[k]
    return m


def _nearest_translate_matrix(width: int, tx: float):
    """One-hot P with out[:, x] = in[:, x + round(tx)]; columns outside
    [lo, hi] must be overwritten with the fill value."""
    s = math.floor(tx + 0.5)
    lo, hi = max(0, -s), min(width - 1, width - 1 - s)
    p = np.zeros((width, width), np.float32)
    for x in range(lo, hi + 1):
        p[x + s, x] = 1.0
    return p, lo, hi


def _pick_block_rows(rows: int, bytes_per_row: int) -> int:
    """Biggest row-block <= ~2 MiB, sublane-aligned, leaving >=2 grid steps."""
    if rows <= 8:
        return rows  # full extent
    by_bytes = (_TARGET_BLOCK_BYTES // max(bytes_per_row, 1)) // 8 * 8
    by_split = (rows // 2) // 8 * 8      # >= 2 steps for the v7x megacore
    return max(8, min(by_bytes, by_split))


def _translate_img_kernel(img_ref, m_ref, out_ref):
    # (block_rows, W) @ (W, W) on the MXU; dtype conversion stays in-register.
    x = img_ref[...].astype(jnp.float32)
    y = jnp.dot(x, m_ref[...], preferred_element_type=jnp.float32)
    if jnp.issubdtype(out_ref.dtype, jnp.integer):
        info = jnp.iinfo(out_ref.dtype)
        y = jnp.clip(jnp.round(y), info.min, info.max)
    out_ref[...] = y.astype(out_ref.dtype)


def _translate_lbl_kernel(lbl_ref, p_ref, out_ref, *, lo, hi, fill_value):
    # Nearest-neighbor shift as a one-hot matmul gather (exact for label ids
    # < 2^8 even under bf16 MXU input rounding), then fill outside [lo, hi].
    l = lbl_ref[...].astype(jnp.float32)
    g = jnp.dot(l, p_ref[...], preferred_element_type=jnp.float32)
    cols = lax.broadcasted_iota(jnp.int32, g.shape, 1)
    valid = (cols >= lo) & (cols <= hi)
    y = jnp.where(valid, g, jnp.float32(fill_value))
    if jnp.issubdtype(out_ref.dtype, jnp.integer):
        y = jnp.round(y)
    out_ref[...] = y.astype(out_ref.dtype)


def _translate_rows(x, mat, kernel):
    """Row-wise out[..., :] = f(x[..., :] @ mat) over the minor (W) axis."""
    orig_shape = x.shape
    width = orig_shape[-1]
    rows = math.prod(orig_shape[:-1])
    x2d = x.reshape(rows, width)  # free: W is already the minor dim

    block_rows = _pick_block_rows(rows, width * x.dtype.itemsize)
    grid = (pl.cdiv(rows, block_rows),)  # partial trailing block is fine

    cost = pl.CostEstimate(
        flops=2 * rows * width * width,
        transcendentals=0,
        bytes_accessed=2 * rows * width * x.dtype.itemsize + width * width * 4)

    out2d = pl.pallas_call(
        kernel,
        out_shape=jax.ShapeDtypeStruct((rows, width), x.dtype),
        grid_spec=pltpu.PrefetchScalarGridSpec(
            num_scalar_prefetch=0,
            grid=grid,
            in_specs=[
                pl.BlockSpec((block_rows, width), lambda i: (i, 0)),
                pl.BlockSpec((width, width), lambda i: (0, 0)),  # stays resident
            ],
            out_specs=pl.BlockSpec((block_rows, width), lambda i: (i, 0)),
        ),
        input_output_aliases={0: 0},  # purely row-local op: write in place
        compiler_params=pltpu.CompilerParams(
            dimension_semantics=("parallel",)),
        cost_estimate=cost,
    )(x2d, mat)
    return out2d.reshape(orig_shape)


def translate_x_pallas(image, label, factor, fill_value,
                       distribution="constant"):
    """Reproduces TranslateX.forward(image, label) for tensors laid out NCHW /
    N(H)W with W as the last axis."""
    if distribution != "constant":
        # TODO(synk): 'normal'/'uniform'/'positive-negative' draw host-side
        # randomness (np/random); only the deterministic 'constant' path is
        # implemented here.
        raise NotImplementedError("only 'constant' distribution supported")
    width = image.shape[-1]
    if label.shape[-1] != width:
        raise ValueError("image and label must have the same width")

    tx = float(factor) * float(width)  # PIL: src_x = x + factor * image.width

    m_img = jnp.asarray(_bicubic_translate_matrix(width, tx))
    p_np, lo, hi = _nearest_translate_matrix(width, tx)
    p_lbl = jnp.asarray(p_np)

    out_img = _translate_rows(image, m_img, _translate_img_kernel)
    lbl_kernel = functools.partial(_translate_lbl_kernel, lo=lo, hi=hi,
                                   fill_value=fill_value)
    out_lbl = _translate_rows(label, p_lbl, lbl_kernel)
    return out_img, out_lbl


def _reference_translate_x(image, label, factor, fill_value):
    """Independent pure-JAX reference (direct 4-tap bicubic / nearest gather)."""
    width = image.shape[-1]
    tx = float(factor) * float(width)
    s0 = math.floor(tx)
    w = _bicubic_weights(tx - s0)

    img_f = image.astype(jnp.float32)
    acc = jnp.zeros_like(img_f)
    for k in range(4):
        taps = np.clip(np.arange(width) + s0 - 1 + k, 0, width - 1)
        acc = acc + w[k] * jnp.take(img_f, jnp.asarray(taps), axis=-1)
    valid_img = jnp.asarray(
        np.array([0.0 <= x + tx <= width - 1 for x in range(width)]))
    ref_img = jnp.where(valid_img, acc, 0.0).astype(image.dtype)

    s = math.floor(tx + 0.5)
    src = np.arange(width) + s
    valid_lbl = jnp.asarray((src >= 0) & (src <= width - 1))
    gathered = jnp.take(label, jnp.asarray(np.clip(src, 0, width - 1)), axis=-1)
    ref_lbl = jnp.where(valid_lbl, gathered,
                        jnp.asarray(fill_value, label.dtype))
    return ref_img, ref_lbl


if __name__ == "__main__":
    key = jax.random.PRNGKey(0)
    k_img, k_lbl = jax.random.split(key)

    # image: NCHW float32 in [0, 1]; label: per-pixel segmentation map (N, H, W)
    N, C, H, W = 2, 4, 16, 16
    image = jax.random.uniform(k_img, (N, C, H, W), jnp.float32)
    label = jax.random.randint(k_lbl, (N, H, W), 0, 5, jnp.int32)

    factor = 0.3        # TranslateX(factor=0.3, fill_value=255, 'constant')
    fill_value = 255

    fn = jax.jit(translate_x_pallas,
                 static_argnames=("factor", "fill_value", "distribution"))
    out_img, out_lbl = fn(image, label, factor=factor, fill_value=fill_value)
    out_img = jax.block_until_ready(out_img)
    out_lbl = jax.block_until_ready(out_lbl)

    ref_img, ref_lbl = _reference_translate_x(image, label, factor, fill_value)

    assert out_img.shape == image.shape and out_img.dtype == image.dtype
    assert out_lbl.shape == label.shape and out_lbl.dtype == label.dtype
    # Loose atol covers the MXU's default f32 matmul precision (bf16 input
    # rounding); on [0, 1] pixel data the worst case is ~0.005.
    assert jnp.allclose(out_img, ref_img, atol=2e-2, rtol=0.0), "image mismatch"
    assert (out_lbl == ref_lbl).all(), "label mismatch"

    print("KERNEL_OK")
</pallas_src>

<mosaic_0001>
module attributes {stable_mosaic.version = 11 : i64} {
  func.func @_translate_lbl_kernel(%arg0: i32, %arg1: memref<16x16xi32, #tpu.memory_space<vmem>>, %arg2: memref<16x16xf32, #tpu.memory_space<vmem>>, %arg3: memref<16x16xi32, #tpu.memory_space<vmem>>) attributes {dimension_semantics = [#tpu.dimension_semantics<parallel>], iteration_bounds = array<i64: 2>, scalar_prefetch = 0 : i64, scratch_operands = 0 : i64, tpu.core_type = #tpu.core_type<tc>, window_params = [{transform_indices = @transform_0, window_bounds = array<i64: 16, 16>}, {pipeline_mode = #tpu.pipeline_mode<synchronous>, transform_indices = @transform_1, window_bounds = array<i64: 16, 16>}, {transform_indices = @transform_2, window_bounds = array<i64: 16, 16>}]} {
    %c0 = arith.constant 0 : index
    %c0_0 = arith.constant 0 : index
    %0 = vector.load %arg1[%c0, %c0_0] : memref<16x16xi32, #tpu.memory_space<vmem>>, vector<16x16xi32>
    %1 = arith.sitofp %0 : vector<16x16xi32> to vector<16x16xf32>
    %c0_1 = arith.constant 0 : index
    %c0_2 = arith.constant 0 : index
    %2 = vector.load %arg2[%c0_1, %c0_2] : memref<16x16xf32, #tpu.memory_space<vmem>>, vector<16x16xf32>
    %cst = arith.constant dense<0.000000e+00> : vector<16x16xf32>
    %3 = tpu.matmul %1, %2, %cst {dimension_numbers = #tpu.dot_dimension_numbers<[1], [0], [0], [1], [0, 0, 1, 1], [], []>} : vector<16x16xf32>, vector<16x16xf32>, vector<16x16xf32> -> vector<16x16xf32>
    %4 = tpu.iota {dimensions = array<i32: 1>} : vector<16x16xi32>
    %c0_i32 = arith.constant 0 : i32
    %5 = vector.broadcast %c0_i32 : i32 to vector<16x16xi32>
    %6 = arith.cmpi sge, %4, %5 : vector<16x16xi32>
    %c10_i32 = arith.constant 10 : i32
    %7 = vector.broadcast %c10_i32 : i32 to vector<16x16xi32>
    %8 = arith.cmpi sle, %4, %7 : vector<16x16xi32>
    %9 = arith.andi %6, %8 : vector<16x16xi1>
    %cst_3 = arith.constant 2.550000e+02 : f32
    %10 = vector.broadcast %cst_3 : f32 to vector<16x16xf32>
    %11 = arith.select %9, %3, %10 : vector<16x16xi1>, vector<16x16xf32>
    %12 = math.roundeven %11 : vector<16x16xf32>
    %13 = arith.fptosi %12 : vector<16x16xf32> to vector<16x16xi32>
    %c0_4 = arith.constant 0 : index
    %c0_5 = arith.constant 0 : index
    %14 = vector.load %arg3[%c0_4, %c0_5] : memref<16x16xi32, #tpu.memory_space<vmem>>, vector<16x16xi32>
    tpu.vector_store %arg3[%c0_4, %c0_5], %13 {strides = array<i32>} : memref<16x16xi32, #tpu.memory_space<vmem>>, vector<16x16xi32>,
    return
  }
  func.func @transform_0(%arg0: i32) -> (i32, i32) {
    %c0_i32 = arith.constant 0 : i32
    %c0_i32_0 = arith.constant 0 : i32
    return %arg0, %c0_i32 : i32, i32
  }
  func.func @transform_1(%arg0: i32) -> (i32, i32) {
    %c0_i32 = arith.constant 0 : i32
    %c0_i32_0 = arith.constant 0 : i32
    %c0_i32_1 = arith.constant 0 : i32
    return %c0_i32, %c0_i32_0 : i32, i32
  }
  func.func @transform_2(%arg0: i32) -> (i32, i32) {
    %c0_i32 = arith.constant 0 : i32
    %c0_i32_0 = arith.constant 0 : i32
    return %arg0, %c0_i32 : i32, i32
  }
}

module attributes {stable_mosaic.version = 11 : i64} {
  func.func @_translate_img_kernel(%arg0: i32, %arg1: memref<64x16xf32, #tpu.memory_space<vmem>>, %arg2: memref<16x16xf32, #tpu.memory_space<vmem>>, %arg3: memref<64x16xf32, #tpu.memory_space<vmem>>) attributes {dimension_semantics = [#tpu.dimension_semantics<parallel>], iteration_bounds = array<i64: 2>, scalar_prefetch = 0 : i64, scratch_operands = 0 : i64, tpu.core_type = #tpu.core_type<tc>, window_params = [{transform_indices = @transform_0, window_bounds = array<i64: 64, 16>}, {pipeline_mode = #tpu.pipeline_mode<synchronous>, transform_indices = @transform_1, window_bounds = array<i64: 16, 16>}, {transform_indices = @transform_2, window_bounds = array<i64: 64, 16>}]} {
    %c0 = arith.constant 0 : index
    %c0_0 = arith.constant 0 : index
    %0 = vector.load %arg1[%c0, %c0_0] : memref<64x16xf32, #tpu.memory_space<vmem>>, vector<64x16xf32>
    %c0_1 = arith.constant 0 : index
    %c0_2 = arith.constant 0 : index
    %1 = vector.load %arg2[%c0_1, %c0_2] : memref<16x16xf32, #tpu.memory_space<vmem>>, vector<16x16xf32>
    %cst = arith.constant dense<0.000000e+00> : vector<64x16xf32>
    %2 = tpu.matmul %0, %1, %cst {dimension_numbers = #tpu.dot_dimension_numbers<[1], [0], [0], [1], [0, 0, 1, 1], [], []>} : vector<64x16xf32>, vector<16x16xf32>, vector<64x16xf32> -> vector<64x16xf32>
    %c0_3 = arith.constant 0 : index
    %c0_4 = arith.constant 0 : index
    %3 = vector.load %arg3[%c0_3, %c0_4] : memref<64x16xf32, #tpu.memory_space<vmem>>, vector<64x16xf32>
    tpu.vector_store %arg3[%c0_3, %c0_4], %2 {strides = array<i32>} : memref<64x16xf32, #tpu.memory_space<vmem>>, vector<64x16xf32>,
    return
  }
  func.func @transform_0(%arg0: i32) -> (i32, i32) {
    %c0_i32 = arith.constant 0 : i32
    %c0_i32_0 = arith.constant 0 : i32
    return %arg0, %c0_i32 : i32, i32
  }
  func.func @transform_1(%arg0: i32) -> (i32, i32) {
    %c0_i32 = arith.constant 0 : i32
    %c0_i32_0 = arith.constant 0 : i32
    %c0_i32_1 = arith.constant 0 : i32
    return %c0_i32, %c0_i32_0 : i32, i32
  }
  func.func @transform_2(%arg0: i32) -> (i32, i32) {
    %c0_i32 = arith.constant 0 : i32
    %c0_i32_0 = arith.constant 0 : i32
    return %arg0, %c0_i32 : i32, i32
  }
}

</mosaic_0001>

<bundles_post_ra>
// kernel: translate_x_pallas.2
= control target key start
LH: loop header
LB: loop body
LE: loop exit
PB: predicated region body
PF: predicated region fallthrough
CT: control target
= control target key end

     0   :  { %s431_s9 = smov 0   ;;  %s470_s0 = inlined_call_operand.vmem [shape: f32[128,16], index: 0, kind: input, shape index: {}, may-alias: {0,2}]   ;;  %s471_s1 = inlined_call_operand.vmem [shape: f32[16,16], index: 1, kind: input, shape index: {}]   ;;  %s472_s2 = inlined_call_operand.vmem [shape: f32[128,16], index: 2, kind: output, shape index: {}, may-alias: {0,2}]  }
   0x1 LB: > { %s351_s10 = sadd.s32 4294967295, %s414_s9   ;;  %p355_p0 = scmp.ge.s32.totalorder %s414_s9, 1  ;;  %s414_s9 = sphi %s431_s9, %s12_s9  }
   0x2   : > { %p113_p1 = scmp.lt.s32.totalorder %s414_s9, 3 }
   0x4   : > { %p114_p2 = pnand %p355_p0, %p113_p1 }
   0x5   : > { %s356_s15 = sshll.u32 (!%p114_p2), %s351_s10, 3 }
   0x6   : > { %117 = sbr.rel (%p114_p2) target bundleno = 217 (0xd9), region = 28  ;;  %p136_p3 = scmp.lt.s32.totalorder (!%p114_p2), %s356_s15, 15 }
   0xb   : > { %v156_v0 = vld [vmem:[%s471_s1 + $0x8] sm:$0xff]  ;;  %v155_v1 = vld [vmem:[%s471_s1] sm:$0xff]  ;;  %s474_s15 = smov (!%p136_p3, %s356_s15), 15  ;;  %vm157_vm0 = vcmask 130048  }
   0xc   : > { %380 = vmatprep.subr.mxu0 %v156_v0  ;;  %396 = vmatprep.subr.mxu1 %v156_v0  ;;  %s357_s16 = sshll.u32 %s474_s15, 3 }
   0xd   : > { %381 = vmatpush3.msra.mxu0 %v156_v0  ;;  %398 = vmatpush3.msra.mxu1 %v156_v0  ;;  %s139_s19 = scalar_lea.vmem %s470_s0, %s357_s16  ;;  %s145_s22 = scalar_lea.vmem %s472_s2, %s357_s16 }
   0xe   : > { %382 = vmatprep.subr.mxu0 %v155_v1  ;;  %397 = vmatprep.subr.mxu1 %v155_v1  ;;  %v147_v2 = vld [vmem:[%s139_s19] sm:$0xff]  ;;  %v148_v4 = vld [vmem:[%s139_s19 + $0x8] sm:$0xff]  ;;  %v149_v6 = vld [vmem:[%s139_s19 + $0x10] sm:$0xff] }
   0xf   : > { %383 = vmatpush3.msra.mxu0 %v155_v1  ;;  %399 = vmatpush3.msra.mxu1 %v155_v1  ;;  %v151_v3 = vld [vmem:[%s139_s19 + $0x20] sm:$0xff]  ;;  %v152_v5 = vld [vmem:[%s139_s19 + $0x28] sm:$0xff]  ;;  %v153_v7 = vld [vmem:[%s139_s19 + $0x30] sm:$0xff] }
  0x10   : > { %384 = vmatprep.mubr.msk.f32.mxu0 %vm157_vm0, %v147_v2  ;;  %390 = vmatprep.mubr.msk.f32.mxu1 %vm157_vm0, %v151_v3  ;;  %v150_v8 = vld [vmem:[%s139_s19 + $0x18] sm:$0xff] }
  0x11   : > { %385 = vmatmul.mubr.msk.f32.vlgmr.msra.gmra.mxu0 %vm157_vm0, %v148_v4  ;;  %391 = vmatmul.mubr.msk.f32.vlgmr.msra.gmra.mxu1 %vm157_vm0, %v152_v5  ;;  %v154_v9 = vld [vmem:[%s139_s19 + $0x38] sm:$0xff] }
  0x12   : > { %387 = vmatprep.mubr.msk.f32.mxu0 %vm157_vm0, %v149_v6  ;;  %393 = vmatprep.mubr.msk.f32.mxu1 %vm157_vm0, %v153_v7 }
  0x15   : > { %388 = vmatmul.mubr.msk.f32.gmra.mxu0 %vm157_vm0, %v150_v8  ;;  %394 = vmatmul.mubr.msk.f32.gmra.mxu1 %vm157_vm0, %v154_v9 }
  0xd1   : > { %v386_v10 = vpop.f32.mrf.mxu0  ;;  %v392_v11 = vpop.f32.mrf.mxu1 }
  0xd2   : > { %288 = vst.msk [vmem:[%s145_s22 + $0x8] sm:$0xff] %vm157_vm0, %v386_v10  ;;  %292 = vst.msk [vmem:[%s145_s22 + $0x28] sm:$0xff] %vm157_vm0, %v392_v11 }
  0xd3   : > { %v248_v12 = vpop.f32.mrf.mxu0  ;;  %v268_v13 = vpop.f32.mrf.mxu1 }
  0xd4   : > { %287 = vst.msk [vmem:[%s145_s22] sm:$0xff] %vm157_vm0, %v248_v12  ;;  %291 = vst.msk [vmem:[%s145_s22 + $0x20] sm:$0xff] %vm157_vm0, %v268_v13 }
  0xd5   : > { %v389_v14 = vpop.f32.mrf.mxu0  ;;  %v395_v15 = vpop.f32.mrf.mxu1 }
  0xd6   : > { %290 = vst.msk [vmem:[%s145_s22 + $0x18] sm:$0xff] %vm157_vm0, %v389_v14  ;;  %294 = vst.msk [vmem:[%s145_s22 + $0x38] sm:$0xff] %vm157_vm0, %v395_v15 }
  0xd7   : > { %v258_v16 = vpop.f32.mrf.mxu0  ;;  %v278_v17 = vpop.f32.mrf.mxu1 }
  0xd8   : > { %289 = vst.msk [vmem:[%s145_s22 + $0x10] sm:$0xff] %vm157_vm0, %v258_v16  ;;  %293 = vst.msk [vmem:[%s145_s22 + $0x30] sm:$0xff] %vm157_vm0, %v278_v17 }
  0xd9 PF: > { %s12_s9 = sadd.s32 1, %s414_s9  }
  0xda   : > { %p9_p4 = scmp.ge.s32.totalorder %s12_s9, 4  }
  0xdc   :  { %11 = sbr.rel (!%p9_p4) target bundleno = 1 (0x1), region = 58 }

// kernel: translate_x_pallas.3
= control target key start
LH: loop header
LB: loop body
LE: loop exit
PB: predicated region body
PF: predicated region fallthrough
CT: control target
= control target key end

     0   :  { %s363_s9 = smov 0   ;;  %s390_s0 = inlined_call_operand.vmem [shape: s32[32,16], index: 0, kind: input, shape index: {}, may-alias: {0,2}]   ;;  %s391_s1 = inlined_call_operand.vmem [shape: f32[16,16], index: 1, kind: input, shape index: {}]   ;;  %s392_s2 = inlined_call_operand.vmem [shape: s32[32,16], index: 2, kind: output, shape index: {}, may-alias: {0,2}]  }
   0x1 LB: > { %s302_s10 = sadd.s32 4294967295, %s346_s9   ;;  %p306_p0 = scmp.ge.s32.totalorder %s346_s9, 1  ;;  %s346_s9 = sphi %s363_s9, %s12_s9  }
   0x2   : > { %p113_p1 = scmp.lt.s32.totalorder %s346_s9, 3 }
   0x4   : > { %p114_p2 = pnand %p306_p0, %p113_p1 }
   0x5   : > { %s307_s15 = sshll.u32 (!%p114_p2), %s302_s10, 1 }
   0x6   : > { %117 = sbr.rel (%p114_p2) target bundleno = 217 (0xd9), region = 28  ;;  %p136_p3 = scmp.lt.s32.totalorder (!%p114_p2), %s307_s15, 3 }
   0xb   : > { %v152_v0 = vld [vmem:[%s391_s1 + $0x8] sm:$0xff]  ;;  %v151_v1 = vld [vmem:[%s391_s1] sm:$0xff]  ;;  %s394_s15 = smov (!%p136_p3, %s307_s15), 3  ;;  %vm153_vm0 = vcmask 130048   ;;  %v235_v6 = vlaneseq }
   0xc   : > { %319 = vmatprep.subr.mxu0 %v152_v0  ;;  %s308_s16 = sshll.u32 %s394_s15, 3 }
   0xd   : > { %320 = vmatpush3.msra.mxu0 %v152_v0  ;;  %s139_s19 = scalar_lea.vmem %s390_s0, %s308_s16  ;;  %v236_v7 = vand.u32 127, %v235_v6  ;;  %s145_s22 = scalar_lea.vmem %s392_s2, %s308_s16 }
   0xe   : > { %321 = vmatprep.subr.mxu0 %v151_v1  ;;  %v147_v2 = vld [vmem:[%s139_s19] sm:$0xff]  ;;  %v148_v3 = vld [vmem:[%s139_s19 + $0x8] sm:$0xff] }
   0xf   : > { %322 = vmatpush3.msra.mxu0 %v151_v1  ;;  %v149_v4 = vcvt.s32.f32 %v147_v2  ;;  %v150_v5 = vcvt.s32.f32 %v148_v3  ;;  %vm238_vm1 = vcmp.le.s32.totalorder %v236_v7, 10 }
  0x11   : > { %323 = vmatprep.mubr.msk.f32.mxu0 %vm153_vm0, %v149_v4 }
  0x12   : > { %324 = vmatmul.mubr.msk.f32.vlgmr.msra.gmra.mxu0 %vm153_vm0, %v150_v5 }
  0xd2   : > { %v325_v8 = vpop.f32.mrf.mxu0 }
  0xd3   : > { %v241_v9 = vsel %vm238_vm1, %v325_v8, 255.0 }
  0xd4   : > { %v226_v10 = vpop.f32.mrf.mxu0  ;;  %v331_v13 = vcvt.f32.s32 %v241_v9 }
  0xd5   : > { %v240_v11 = vsel %vm238_vm1, %v226_v10, 255.0 }
  0xd6   : > { %v328_v12 = vcvt.f32.s32 %v240_v11  ;;  %245 = vst.msk [vmem:[%s145_s22 + $0x8] sm:$0xff] %vm153_vm0, %v331_v13 }
  0xd8   : > { %244 = vst.msk [vmem:[%s145_s22] sm:$0xff] %vm153_vm0, %v328_v12 }
  0xd9 PF: > { %s12_s9 = sadd.s32 1, %s346_s9  }
  0xda   : > { %p9_p4 = scmp.ge.s32.totalorder %s12_s9, 4  }
  0xdc   :  { %11 = sbr.rel (!%p9_p4) target bundleno = 1 (0x1), region = 58 }

</bundles_post_ra>
